<compile_context>
chip_gen: v6e
topology: v6e:2x2x1
jax: 0.10.0
libtpu: 0.0.40
codegen_flags: <defaults>
</compile_context>

<pallas_src>
import functools

import jax
import jax.numpy as jnp
from jax.experimental import pallas as pl
from jax.experimental.pallas import tpu as pltpu

_LANE_CANDIDATES = (512, 256, 128)   # all multiples of 128 -> unmasked stores
_BLOCK_BYTES = 4 * 1024 * 1024       # ~4 MiB per stream per block (dtype-agnostic)
_VMEM_LIMIT_BYTES = 48 * 1024 * 1024 # 4 streams x 2 bufs x 4 MiB = 32 MiB + slack
_SMALL_INPUT_ELEMS = 1 << 20         # below this, plain jnp.maximum (XLA fuses it)


def _interval_relu_kernel(lb_ref, ub_ref, lb_out_ref, ub_out_ref):
    # Pure VPU elementwise hot path.
    zero = jnp.zeros((), dtype=lb_ref.dtype)
    lb_out_ref[...] = jnp.maximum(lb_ref[...], zero)
    ub_out_ref[...] = jnp.maximum(ub_ref[...], zero)


def _round_up(x: int, m: int) -> int:
    return ((x + m - 1) // m) * m


def _sublane(dtype) -> int:
    # Minimum packing tile rows: (8,128) for 32-bit, (16,128) bf16, (32,128) int8/fp8.
    itemsize = jnp.dtype(dtype).itemsize
    return 8 * max(1, 4 // itemsize)


def _relu_2d(lb2: jax.Array, ub2: jax.Array, lane: int, tile_rows: int):
    rows = lb2.shape[0]
    itemsize = jnp.dtype(lb2.dtype).itemsize
    block = pl.BlockSpec((tile_rows, lane), lambda i: (i, 0))
    grid = (pl.cdiv(rows, tile_rows),)   # ragged last block is masked by Pallas

    return pl.pallas_call(
        _interval_relu_kernel,
        out_shape=(
            jax.ShapeDtypeStruct((rows, lane), lb2.dtype),
            jax.ShapeDtypeStruct((rows, lane), ub2.dtype),
        ),
        grid=grid,
        in_specs=[block, block],
        out_specs=[block, block],
        compiler_params=pltpu.CompilerParams(
            # "parallel" is safe on every generation.  On v7x, consider
            # pltpu.CORE_PARALLEL (verify with xprof that one TC's DMA queues
            # don't already saturate chip HBM bandwidth before keeping it).
            dimension_semantics=("parallel",),
            vmem_limit_bytes=_VMEM_LIMIT_BYTES,
        ),
        cost_estimate=pl.CostEstimate(
            flops=2 * rows * lane,
            transcendentals=0,
            bytes_accessed=4 * rows * lane * itemsize,  # 2 reads + 2 writes
        ),
    )(lb2, ub2)


@functools.partial(jax.jit, static_argnames=("force_pallas",))
def interval_relu(lb: jax.Array, ub: jax.Array, *, force_pallas: bool = False):
    """Interval ReLU transformer: returns (relu(lb), relu(ub))."""
    assert lb.shape == ub.shape and lb.dtype == ub.dtype
    total = lb.size

    # Small-input bypass: the fixed pallas_call cost dwarfs <1 MiB of traffic.
    if total == 0 or (total < _SMALL_INPUT_ELEMS and not force_pallas):
        return jnp.maximum(lb, 0), jnp.maximum(ub, 0)

    sub = _sublane(lb.dtype)
    itemsize = jnp.dtype(lb.dtype).itemsize

    # Widest lane width that divides the flat size -> zero-copy lane-dense view.
    lane = None
    for cand in _LANE_CANDIDATES:
        if total % cand == 0:
            lane = cand
            break

    flat_lb = lb.reshape(-1)   # contiguous reshape: free, no HBM traffic
    flat_ub = ub.reshape(-1)

    if lane is not None:
        pad = 0
        rows = total // lane
    else:
        # Rare fallback (total not a multiple of 128): pad the flat stream by
        # <128 elements.  This does materialize one copy each way, but only
        # for lane-unfriendly sizes; padded lanes hold zeros (ReLU(0)=0) and
        # are sliced off afterwards.
        lane = 128
        padded = _round_up(total, lane)
        pad = padded - total
        flat_lb = jnp.pad(flat_lb, (0, pad))
        flat_ub = jnp.pad(flat_ub, (0, pad))
        rows = padded // lane

    # Byte-budgeted block: ~4 MiB per stream, dtype-aware, sublane-aligned.
    tile_rows = max(sub, _BLOCK_BYTES // (lane * itemsize))
    tile_rows = _round_up(tile_rows, sub)
    tile_rows = min(tile_rows, _round_up(rows, sub))

    lb2 = flat_lb.reshape(rows, lane)
    ub2 = flat_ub.reshape(rows, lane)

    lb_out2, ub_out2 = _relu_2d(lb2, ub2, lane, tile_rows)

    lb_out = lb_out2.reshape(-1)
    ub_out = ub_out2.reshape(-1)
    if pad:
        lb_out = lb_out[:total]
        ub_out = ub_out[:total]
    return lb_out.reshape(lb.shape), ub_out.reshape(ub.shape)


class NodeIntervalElement:
    """Minimal JAX mirror of the PyTorch NodeIntervalElement."""

    def __init__(self, lb, ub, edge_index, node_id=None):
        self._lb = lb
        self._ub = ub
        self.edge_index = edge_index
        self.node_id = node_id

    def lb(self):
        return self._lb

    def ub(self):
        return self._ub

    def inside(self, point, eps=1e-5):
        return bool(
            jnp.all(point >= self._lb - eps) & jnp.all(point <= self._ub + eps)
        )


class AbstractRelu:
    """JAX/Pallas counterpart of the PyTorch AbstractRelu module."""

    def __init__(self, other=None):
        # The PyTorch module has no parameters; nothing to initialize.
        pass

    def __call__(self, abstract_ele: NodeIntervalElement, edge_weights=None,
                 force_pallas: bool = False):
        lb_out, ub_out = interval_relu(
            abstract_ele.lb(), abstract_ele.ub(), force_pallas=force_pallas
        )
        return NodeIntervalElement(lb_out, ub_out, abstract_ele.edge_index)


if __name__ == "__main__":
    key = jax.random.PRNGKey(0)
    k_lb, k_ub, k_ei = jax.random.split(key, 3)

    num_nodes, feat = 8, 32  # small node-feature shapes consistent with forward

    # Build lb <= ub deterministically.
    a = jax.random.normal(k_lb, (num_nodes, feat), dtype=jnp.float32)
    b = jax.random.normal(k_ub, (num_nodes, feat), dtype=jnp.float32)
    lb = jnp.minimum(a, b)
    ub = jnp.maximum(a, b)

    # Synthetic edge_index (passed through unchanged, not touched by kernel).
    edge_index = jax.random.randint(k_ei, (2, 16), 0, num_nodes, dtype=jnp.int32)

    ele = NodeIntervalElement(lb, ub, edge_index)
    module = AbstractRelu(None)

    # Force the Pallas path so the kernel is exercised even at demo size.
    out = module(ele, force_pallas=True)
    jax.block_until_ready(out.lb())
    jax.block_until_ready(out.ub())

    # Also exercise the auto-dispatch (small-shape bypass) path.
    out_auto = module(ele)
    jax.block_until_ready(out_auto.lb())

    # Exercise the ragged-tail fallback path (total % 128 != 0) at small size.
    odd = jax.random.normal(k_lb, (7, 13), dtype=jnp.float32)
    odd_lb, odd_ub = jnp.minimum(odd, -odd), jnp.maximum(odd, -odd)
    odd_out_lb, odd_out_ub = interval_relu(odd_lb, odd_ub, force_pallas=True)
    jax.block_until_ready(odd_out_lb)

    # Semantic checks against plain JAX ReLU.
    ref_lb = jnp.maximum(lb, 0.0)
    ref_ub = jnp.maximum(ub, 0.0)
    assert jnp.allclose(out.lb(), ref_lb)
    assert jnp.allclose(out.ub(), ref_ub)
    assert jnp.allclose(out_auto.lb(), ref_lb)
    assert jnp.allclose(out_auto.ub(), ref_ub)
    assert jnp.allclose(odd_out_lb, jnp.maximum(odd_lb, 0.0))
    assert jnp.allclose(odd_out_ub, jnp.maximum(odd_ub, 0.0))
    assert out.edge_index is edge_index

    print("KERNEL_OK")
</pallas_src>

<mosaic_0001>
module attributes {stable_mosaic.version = 11 : i64} {
  func.func @_interval_relu_kernel(%arg0: i32, %arg1: memref<8x256xf32, #tpu.memory_space<vmem>>, %arg2: memref<8x256xf32, #tpu.memory_space<vmem>>, %arg3: memref<8x256xf32, #tpu.memory_space<vmem>>, %arg4: memref<8x256xf32, #tpu.memory_space<vmem>>) attributes {dimension_semantics = [#tpu.dimension_semantics<parallel>], iteration_bounds = array<i64: 1>, scalar_prefetch = 0 : i64, scratch_operands = 0 : i64, tpu.core_type = #tpu.core_type<tc>, window_params = [{transform_indices = @transform_0, window_bounds = array<i64: 8, 256>}, {transform_indices = @transform_1, window_bounds = array<i64: 8, 256>}, {transform_indices = @transform_2, window_bounds = array<i64: 8, 256>}, {transform_indices = @transform_3, window_bounds = array<i64: 8, 256>}]} {
    %c0 = arith.constant 0 : index
    %c0_0 = arith.constant 0 : index
    %0 = vector.load %arg1[%c0, %c0_0] : memref<8x256xf32, #tpu.memory_space<vmem>>, vector<8x256xf32>
    %cst = arith.constant 0.000000e+00 : f32
    %1 = vector.broadcast %cst : f32 to vector<8x256xf32>
    %2 = arith.maximumf %0, %1 : vector<8x256xf32>
    %c0_1 = arith.constant 0 : index
    %c0_2 = arith.constant 0 : index
    %3 = vector.load %arg3[%c0_1, %c0_2] : memref<8x256xf32, #tpu.memory_space<vmem>>, vector<8x256xf32>
    tpu.vector_store %arg3[%c0_1, %c0_2], %2 {strides = array<i32>} : memref<8x256xf32, #tpu.memory_space<vmem>>, vector<8x256xf32>,
    %c0_3 = arith.constant 0 : index
    %c0_4 = arith.constant 0 : index
    %4 = vector.load %arg2[%c0_3, %c0_4] : memref<8x256xf32, #tpu.memory_space<vmem>>, vector<8x256xf32>
    %cst_5 = arith.constant 0.000000e+00 : f32
    %5 = vector.broadcast %cst_5 : f32 to vector<8x256xf32>
    %6 = arith.maximumf %4, %5 : vector<8x256xf32>
    %c0_6 = arith.constant 0 : index
    %c0_7 = arith.constant 0 : index
    %7 = vector.load %arg4[%c0_6, %c0_7] : memref<8x256xf32, #tpu.memory_space<vmem>>, vector<8x256xf32>
    tpu.vector_store %arg4[%c0_6, %c0_7], %6 {strides = array<i32>} : memref<8x256xf32, #tpu.memory_space<vmem>>, vector<8x256xf32>,
    return
  }
  func.func @transform_0(%arg0: i32) -> (i32, i32) {
    %c0_i32 = arith.constant 0 : i32
    %c0_i32_0 = arith.constant 0 : i32
    return %arg0, %c0_i32 : i32, i32
  }
  func.func @transform_1(%arg0: i32) -> (i32, i32) {
    %c0_i32 = arith.constant 0 : i32
    %c0_i32_0 = arith.constant 0 : i32
    return %arg0, %c0_i32 : i32, i32
  }
  func.func @transform_2(%arg0: i32) -> (i32, i32) {
    %c0_i32 = arith.constant 0 : i32
    %c0_i32_0 = arith.constant 0 : i32
    return %arg0, %c0_i32 : i32, i32
  }
  func.func @transform_3(%arg0: i32) -> (i32, i32) {
    %c0_i32 = arith.constant 0 : i32
    %c0_i32_0 = arith.constant 0 : i32
    return %arg0, %c0_i32 : i32, i32
  }
}

</mosaic_0001>

<bundles_post_ra>
// kernel: interval_relu.1
= control target key start
LH: loop header
LB: loop body
LE: loop exit
PB: predicated region body
PF: predicated region fallthrough
CT: control target
= control target key end

     0   :  { %v29_v1 = vlaneseq  ;;  %s179_s0 = inlined_call_operand.vmem [shape: f32[1,256], index: 0, kind: input, shape index: {}]   ;;  %s180_s1 = inlined_call_operand.vmem [shape: f32[1,256], index: 1, kind: input, shape index: {}]   ;;  %s181_s2 = inlined_call_operand.vmem [shape: f32[1,256], index: 2, kind: output, shape index: {0}]   ;;  %s182_s3 = inlined_call_operand.vmem [shape: f32[1,256], index: 3, kind: output, shape index: {1}]  }
   0x1   :  { %v13_v0 = vld [vmem:[%s179_s0] sm:$0x3] }
   0x2   :  { %v41_v2 = vld [vmem:[%s180_s1] sm:$0x3]  ;;  %v21_v3 = vmax.f32 %v13_v0, 0.0  ;;  %vm31_vm0 = vcmp.lt.s32.totalorder %v29_v1, 256 }
   0x3   :  { %v49_v4 = vmax.f32 %v41_v2, 0.0 }
   0x4   :  { %33 = vst.msk [vmem:[#allocation2] sm:$0x3] %vm31_vm0, %v21_v3 }
   0x5   :  { %57 = vst.msk [vmem:[#allocation3] sm:$0x3] %vm31_vm0, %v49_v4 }
   0xb   :  { %v83_v5 = vld [vmem:[#allocation2] sm:$0x3] }
   0xc   :  { %v118_v6 = vld [vmem:[#allocation3] sm:$0x3]  ;;  %84 = vst [vmem:[%s181_s2] sm:$0x3] %v83_v5 }
   0xd   :  { %119 = vst [vmem:[%s182_s3] sm:$0x3] %v118_v6 }

</bundles_post_ra>
